<compile_context>
chip_gen: v5e
topology: v5e:2x2
jax: 0.10.0
libtpu: 0.0.40
codegen_flags: <defaults>
</compile_context>

<pallas_src>
import functools
import math

import jax
import jax.numpy as jnp
from jax.experimental import pallas as pl
from jax.experimental.pallas import tpu as pltpu


# ---------------------------------------------------------------------------
# Kernel
# ---------------------------------------------------------------------------
def _ln3d_kernel(x_ref, g_ref, b_ref, o_ref, *, eps):
    # x_ref: (C, tile_S)  -- channels on sublanes, flattened spatial on lanes.
    x = x_ref[...]
    g = g_ref[...]                                   # (C, 1), loaded once
    b = b_ref[...]                                   # (C, 1), loaded once
    mu = jnp.mean(x, axis=0, keepdims=True)          # per-pixel channel mean
    xc = x - mu
    var = jnp.mean(xc * xc, axis=0, keepdims=True)   # per-pixel channel var
    o_ref[...] = xc * jax.lax.rsqrt(var + eps) * g + b


# ---------------------------------------------------------------------------
# Wrapper
# ---------------------------------------------------------------------------
def _pick_spatial_tile(S, max_tile=4096):
    """Largest lane-aligned tile (multiple of 128) that divides S, else full S."""
    if S <= max_tile:
        return S
    start = max_tile - (max_tile % 128)
    for t in range(start, 0, -128):
        if S % t == 0:
            return t
    return S


def layernorm3d(x, weight, bias, *, eps=1e-6):
    """x: (B, C, D, H, W); weight/bias: (C,). Normalizes over the channel dim."""
    B, C = x.shape[0], x.shape[1]
    S = math.prod(x.shape[2:])
    x2 = x.reshape(B, C, S)                          # free row-major reshape
    g = weight.reshape(C, 1).astype(x2.dtype)
    b = bias.reshape(C, 1).astype(x2.dtype)

    tile_s = _pick_spatial_tile(S)
    grid = (B, S // tile_s)

    kern = functools.partial(_ln3d_kernel, eps=eps)
    out2 = pl.pallas_call(
        kern,
        out_shape=jax.ShapeDtypeStruct((B, C, S), x2.dtype),
        grid_spec=pltpu.PrefetchScalarGridSpec(
            num_scalar_prefetch=0,
            grid=grid,
            in_specs=[
                # batch dim squeezed out of the kernel view -> kernel sees (C, tile_S)
                pl.BlockSpec((pl.Squeezed(), C, tile_s),
                             lambda bi, si: (bi, 0, si)),
                pl.BlockSpec((C, 1), lambda bi, si: (0, 0)),   # gamma (full, resident)
                pl.BlockSpec((C, 1), lambda bi, si: (0, 0)),   # beta  (full, resident)
            ],
            out_specs=pl.BlockSpec((pl.Squeezed(), C, tile_s),
                                   lambda bi, si: (bi, 0, si)),
        ),
        compiler_params=pltpu.CompilerParams(
            dimension_semantics=("parallel", "parallel")),
    )(x2, g, b)
    return out2.reshape(x.shape)


# ---------------------------------------------------------------------------
# Pure-JAX reference (mirror of the PyTorch forward)
# ---------------------------------------------------------------------------
def layernorm3d_ref(x, w, b, eps=1e-6):
    u = jnp.mean(x, axis=1, keepdims=True)
    s = jnp.mean((x - u) ** 2, axis=1, keepdims=True)
    xn = (x - u) / jnp.sqrt(s + eps)
    return w[None, :, None, None, None] * xn + b[None, :, None, None, None]


# ---------------------------------------------------------------------------
if __name__ == "__main__":
    B, C, D, H, W = 2, 8, 4, 16, 16

    key = jax.random.PRNGKey(0)
    kx, kw, kb = jax.random.split(key, 3)
    x = jax.random.normal(kx, (B, C, D, H, W), jnp.float32)
    # non-trivial affine params so the gamma/beta path is actually exercised
    weight = 1.0 + 0.1 * jax.random.normal(kw, (C,), jnp.float32)
    bias = 0.1 * jax.random.normal(kb, (C,), jnp.float32)

    out = layernorm3d(x, weight, bias, eps=1e-6)
    out = jax.block_until_ready(out)

    ref = layernorm3d_ref(x, weight, bias, eps=1e-6)

    assert out.shape == x.shape
    assert jnp.allclose(out, ref, atol=1e-4, rtol=1e-4), float(
        jnp.max(jnp.abs(out - ref)))

    print("KERNEL_OK")
</pallas_src>

<mosaic_0001>
module attributes {stable_mosaic.version = 11 : i64} {
  func.func @_ln3d_kernel(%arg0: i32, %arg1: i32, %arg2: memref<1x8x1024xf32, #tpu.memory_space<vmem>>, %arg3: memref<8x1xf32, #tpu.memory_space<vmem>>, %arg4: memref<8x1xf32, #tpu.memory_space<vmem>>, %arg5: memref<1x8x1024xf32, #tpu.memory_space<vmem>>) attributes {dimension_semantics = [#tpu.dimension_semantics<parallel>, #tpu.dimension_semantics<parallel>], iteration_bounds = array<i64: 2, 1>, scalar_prefetch = 0 : i64, scratch_operands = 0 : i64, tpu.core_type = #tpu.core_type<tc>, window_params = [{transform_indices = @transform_0, window_bounds = array<i64: 1, 8, 1024>}, {pipeline_mode = #tpu.pipeline_mode<synchronous>, transform_indices = @transform_1, window_bounds = array<i64: 8, 1>}, {pipeline_mode = #tpu.pipeline_mode<synchronous>, transform_indices = @transform_2, window_bounds = array<i64: 8, 1>}, {transform_indices = @transform_3, window_bounds = array<i64: 1, 8, 1024>}]} {
    %c0 = arith.constant 0 : index
    %c0_0 = arith.constant 0 : index
    %c0_1 = arith.constant 0 : index
    %0 = vector.load %arg2[%c0, %c0_0, %c0_1] : memref<1x8x1024xf32, #tpu.memory_space<vmem>>, vector<1x8x1024xf32>
    %1 = vector.shape_cast %0 : vector<1x8x1024xf32> to vector<8x1024xf32>
    %c0_2 = arith.constant 0 : index
    %c0_3 = arith.constant 0 : index
    %2 = vector.load %arg3[%c0_2, %c0_3] : memref<8x1xf32, #tpu.memory_space<vmem>>, vector<8x1xf32>
    %c0_4 = arith.constant 0 : index
    %c0_5 = arith.constant 0 : index
    %3 = vector.load %arg4[%c0_4, %c0_5] : memref<8x1xf32, #tpu.memory_space<vmem>>, vector<8x1xf32>
    %cst = arith.constant dense<0.000000e+00> : vector<1024xf32>
    %4 = vector.multi_reduction <add>, %1, %cst [0] : vector<8x1024xf32> to vector<1024xf32>
    %5 = vector.shape_cast %4 : vector<1024xf32> to vector<1x1024xf32>
    %cst_6 = arith.constant 8.000000e+00 : f32
    %6 = vector.broadcast %cst_6 : f32 to vector<1x1024xf32>
    %7 = arith.divf %5, %6 : vector<1x1024xf32>
    %8 = vector.broadcast %7 : vector<1x1024xf32> to vector<8x1024xf32>
    %9 = arith.subf %1, %8 : vector<8x1024xf32>
    %10 = arith.mulf %9, %9 : vector<8x1024xf32>
    %cst_7 = arith.constant dense<0.000000e+00> : vector<1024xf32>
    %11 = vector.multi_reduction <add>, %10, %cst_7 [0] : vector<8x1024xf32> to vector<1024xf32>
    %12 = vector.shape_cast %11 : vector<1024xf32> to vector<1x1024xf32>
    %cst_8 = arith.constant 8.000000e+00 : f32
    %13 = vector.broadcast %cst_8 : f32 to vector<1x1024xf32>
    %14 = arith.divf %12, %13 : vector<1x1024xf32>
    %cst_9 = arith.constant 9.99999997E-7 : f32
    %15 = vector.broadcast %cst_9 : f32 to vector<1x1024xf32>
    %16 = arith.addf %14, %15 : vector<1x1024xf32>
    %17 = math.rsqrt %16 : vector<1x1024xf32>
    %18 = vector.broadcast %17 : vector<1x1024xf32> to vector<8x1024xf32>
    %19 = arith.mulf %9, %18 : vector<8x1024xf32>
    %20 = vector.broadcast %2 : vector<8x1xf32> to vector<8x1024xf32>
    %21 = arith.mulf %19, %20 : vector<8x1024xf32>
    %22 = vector.broadcast %3 : vector<8x1xf32> to vector<8x1024xf32>
    %23 = arith.addf %21, %22 : vector<8x1024xf32>
    %c0_10 = arith.constant 0 : index
    %c0_11 = arith.constant 0 : index
    %c0_12 = arith.constant 0 : index
    %24 = vector.load %arg5[%c0_10, %c0_11, %c0_12] : memref<1x8x1024xf32, #tpu.memory_space<vmem>>, vector<1x8x1024xf32>
    %25 = vector.shape_cast %24 : vector<1x8x1024xf32> to vector<8x1024xf32>
    %26 = vector.shape_cast %23 : vector<8x1024xf32> to vector<1x8x1024xf32>
    tpu.vector_store %arg5[%c0_10, %c0_11, %c0_12], %26 {strides = array<i32>} : memref<1x8x1024xf32, #tpu.memory_space<vmem>>, vector<1x8x1024xf32>,
    return
  }
  func.func @transform_0(%arg0: i32, %arg1: i32) -> (i32, i32, i32) {
    %c0_i32 = arith.constant 0 : i32
    %c0_i32_0 = arith.constant 0 : i32
    return %arg0, %c0_i32, %arg1 : i32, i32, i32
  }
  func.func @transform_1(%arg0: i32, %arg1: i32) -> (i32, i32) {
    %c0_i32 = arith.constant 0 : i32
    %c0_i32_0 = arith.constant 0 : i32
    %c0_i32_1 = arith.constant 0 : i32
    return %c0_i32, %c0_i32_0 : i32, i32
  }
  func.func @transform_2(%arg0: i32, %arg1: i32) -> (i32, i32) {
    %c0_i32 = arith.constant 0 : i32
    %c0_i32_0 = arith.constant 0 : i32
    %c0_i32_1 = arith.constant 0 : i32
    return %c0_i32, %c0_i32_0 : i32, i32
  }
  func.func @transform_3(%arg0: i32, %arg1: i32) -> (i32, i32, i32) {
    %c0_i32 = arith.constant 0 : i32
    %c0_i32_0 = arith.constant 0 : i32
    return %arg0, %c0_i32, %arg1 : i32, i32, i32
  }
}

</mosaic_0001>

<bundles_post_ra>
// kernel: tpu_custom_call.1
= control target key start
LH: loop header
LB: loop body
LE: loop exit
PB: predicated region body
PF: predicated region fallthrough
CT: control target
= control target key end

     0   :  { %8 = vsyncpa [#allocation3], 0  ;;  %s1190_s0 = inlined_call_operand.hbm [shape: f32[2,8,1024], index: 0, kind: input, shape index: {}]   ;;  %s1191_s1 = inlined_call_operand.vmem [shape: f32[8,1], index: 1, kind: input, shape index: {}]   ;;  %s1192_s2 = inlined_call_operand.vmem [shape: f32[8,1], index: 2, kind: input, shape index: {}]   ;;  %s1193_s3 = inlined_call_operand.hbm [shape: f32[2,8,1024], index: 3, kind: output, shape index: {}]  }
   0x1   :  { %10 = vsyncpa [#allocation3 + $0x1], 0 }
   0x2   :  { %11 = vsyncpa [#allocation4], 0 }
   0x3   :  { %13 = vsyncpa [#allocation4 + $0x1], 0  ;;  %s823_s12 = smov 0   ;;  %s825_s13 = smov 0  }
   0x4   :  { %s827_s14 = smov 0   ;;  %s829_s15 = smov 0  }
   0x5   :  { %s831_s16 = smov 0   ;;  %s833_s17 = smov 0  }
   0x6 LB: > { %s587_s18 = sadd.s32 4294967295, %s799_s17   ;;  %s588_s19 = sadd.s32 4294967294, %s799_s17   ;;  %s799_s17 = sphi %s833_s17, %s19_s17   ;;  %s795_s16 = sphi %s831_s16, %s1214_s16   ;;  %s791_s15 = sphi %s829_s15, %s1213_s15   ;;  %s787_s14 = sphi %s827_s14, %s1212_s14   ;;  %s783_s13 = sphi %s825_s13, %s1211_s13   ;;  %s779_s12 = sphi %s823_s12, %s1210_s12  }
   0x7   : > { %s31_s20 = sadd.s32 1, %s795_s16  ;;  %s40_s21 = sadd.s32 1, %s787_s14 }
   0x8   : > { %p33_p0 = scmp.ge.s32.totalorder %s31_s20, 2  ;;  %p47_p1 = scmp.ne.s32.totalorder %s787_s14, %s783_s13 }
   0x9   : > { %p48_p2 = scmp.eq.s32.totalorder %s799_s17, 0  ;;  %p53_p3 = scmp.ne.s32.totalorder %s783_s13, %s779_s12 }
   0xa   : > { %s1216_s20 = smov (%p33_p0, %s31_s20), 0  ;;  %p54_p5 = scmp.eq.s32.totalorder %s587_s18, 0 }
   0xb   : > { %p864_p4 = por %p48_p2, %p47_p1  ;;  %s35_s23 = ssub.s32 %s795_s16, %s1216_s20 }
   0xc   : > { %p121_p6 = scmp.eq.s32.totalorder %s587_s18, 1  ;;  %p38_p7 = scmp.eq.s32.totalorder %s35_s23, 0 }
   0xd   : > { %p870_p8 = por %p54_p5, %p53_p3  ;;  %p127_p10 = scmp.eq.s32.totalorder %s588_s19, 1 }
   0xe   : > { %p874_p9 = por %p121_p6, %p47_p1  ;;  %p590_p12 = scmp.ge.s32.totalorder %s799_s17, 2 }
   0xf   : > { %s879_s26 = scalar_select %p38_p7, %s787_s14, %s40_s21  }
  0x10   : > { %p881_p11 = por %p127_p10, %p53_p3  ;;  %p616_p13 = scmp.lt.s32.totalorder %s799_s17, 2 }
  0x11   : > { %s153_s28 = sand.u32 1, %s787_s14   ;;  %s602_s30 = sshll.u32 %s795_s16, 6 }
  0x12   : > { %s591_s29 = sshll.u32 %s153_s28, 6  ;;  %s164_s6 = scalar_lea.hbm %s1190_s0, %s602_s30 }
  0x13   : > { %s157_s7 = scalar_lea.vmem [#allocation2], %s591_s29  ;;  %s166_s9 = sshll.u32 %s164_s6, 4  ;;  %s167_s9 = int_to_ptr.hbm [resolvable:$true] %s166_s9 }
  0x14   : > { %s168_s8 = sshll.u32 %s157_s7, 4  ;;  %p609_p0 = pnand %p616_p13, %p864_p4  ;;  %s169_s8 = int_to_ptr.vmem [resolvable:$true] %s168_s8 }
  0x15   : > { %p594_p1 = scmp.ge.s32.totalorder %s799_s17, 1  ;;  %p173_p2 = scmp.lt.s32.totalorder %s799_s17, 3 }
  0x16   : > { %s154_s10 = scalar_lea.sflag [#allocation3], %s153_s28 }
  0x17   : > { %611 = dma.hbm_to_vmem [thread:$0]  (!%p609_p0), %s167_s9, 1024, %s169_s8, %s154_s10  }
  0x18   : > { %p174_p3 = pnand %p594_p1, %p173_p2 }
  0x19   : > { %s897_s11 = sand.u32 (!%p174_p3), 1, %s783_s13  }
  0x1a   : > { %177 = sbr.rel (%p174_p3) target bundleno = 169 (0xa9), region = 32  ;;  %s595_s18 = sshll.u32 (!%p174_p3), %s897_s11, 6 }
  0x1b   : > { %s180_s19 = scalar_lea.sflag (!%p174_p3), [#allocation3], %s897_s11  ;;  %s903_s21 = scalar_lea.vmem (!%p174_p3), [#allocation2], %s595_s18 }
  0x1f   : > { %770 = dma.done.wait (%p870_p8), %s180_s19, 1024  }
  0x20   : > { %772 = vsyncadd (%p870_p8), %s180_s19, 4294966272  ;;  %v801_v0 = vmov 0   ;;  %v217_v1 = vld [vmem:[%s1191_s1] sm:$0xff]  ;;  %v802_v3 = vmov 8.0   ;;  %v919_v5 = vld [vmem:[%s903_s21 + $0x8] sm:$0xff]  ;;  %s603_s24 = sshll.u32 %s791_s15, 6 }
  0x21   : > { %668 = vset.pattern.permute.xlu0 %v801_v0  ;;  %v218_v2 = vld [vmem:[%s1192_s2] sm:$0xff]  ;;  %669 = vrcp.f32 %v802_v3  ;;  %v922_v6 = vld [vmem:[%s903_s21 + $0x10] sm:$0xff]  ;;  %v925_v7 = vld [vmem:[%s903_s21 + $0x18] sm:$0xff]  ;;  %v225_v11 = vrot.slane %v919_v5, 4  ;;  %s498_s5 = scalar_lea.hbm %s1193_s3, %s603_s24  ;;  %s206_s6 = scalar_lea.vmem [#allocation5], %s595_s18 }
  0x22   : > { %452 = vperm.xlu0 %668, %v217_v1   ;;  %v916_v4 = vld [vmem:[%s903_s21] sm:$0xff]  ;;  %v931_v9 = vld [vmem:[%s903_s21 + $0x28] sm:$0xff]  ;;  %v231_v12 = vrot.slane %v922_v6, 4  ;;  %v937_v13 = vld [vmem:[%s903_s21 + $0x30] sm:$0xff]  ;;  %v237_v14 = vrot.slane %v925_v7, 4  ;;  %s500_s15 = sshll.u32 %s206_s6, 4  ;;  %s501_s15 = int_to_ptr.vmem [resolvable:$true] %s500_s15 }
  0x23   : > { %v928_v8 = vld [vmem:[%s903_s21 + $0x20] sm:$0xff]  ;;  %v219_v10 = vrot.slane %v916_v4, 4  ;;  %v249_v16 = vrot.slane %v931_v9, 4  ;;  %v226_v19 = vadd.f32 %v225_v11, %v919_v5  ;;  %v255_v21 = vrot.slane %v937_v13, 4  ;;  %v216_v47 = vld [vmem:[%s903_s21 + $0x38] sm:$0xff]  ;;  %s502_s7 = sshll.u32 %s498_s5, 4  ;;  %s503_s7 = int_to_ptr.hbm [resolvable:$true] %s502_s7 }
  0x24   : > { %v243_v15 = vrot.slane %v928_v8, 4  ;;  %v232_v20 = vadd.f32 %v231_v12, %v922_v6  ;;  %v238_v23 = vadd.f32 %v237_v14, %v925_v7  ;;  %v261_v59 = vrot.slane %v216_v47, 4  ;;  %s485_s8 = scalar_lea.sflag [#allocation4], %s897_s11  ;;  %s731_s9 = sshra.s32 %s503_s7, 4  ;;  %s732_s9 = int_to_ptr.hbm [resolvable:$true] %s731_s9 }
  0x25   : > { %v220_v18 = vadd.f32 %v219_v10, %v916_v4  ;;  %v250_v25 = vadd.f32 %v249_v16, %v931_v9  ;;  %v227_v27 = vrot.slane %v226_v19, 2  ;;  %v256_v29 = vadd.f32 %v255_v21, %v937_v13  ;;  %s733_s10 = scalar_lea.hbm %s732_s9, 64  ;;  %s737_s21 = scalar_lea.hbm %s1193_s3, 128 }
  0x26   : > { %v244_v24 = vadd.f32 %v243_v15, %v928_v8  ;;  %v233_v28 = vrot.slane %v232_v20, 2  ;;  %v239_v31 = vrot.slane %v238_v23, 2  ;;  %v262_v1 = vadd.f32 %v261_v59, %v216_v47  ;;  %p734_p4 = scmp.ne.s32.totalorder %s732_s9, %s733_s10  ;;  %p738_p7 = scmp.lt.s32.totalorder %s732_s9, %s1193_s3 }
  0x27   : > { %v670_v17 = vpop.eup %669  ;;  %v221_v26 = vrot.slane %v220_v18, 2  ;;  %v251_v33 = vrot.slane %v250_v25, 2  ;;  %v228_v35 = vadd.f32 %v227_v27, %v226_v19  ;;  %v257_v37 = vrot.slane %v256_v29, 2  ;;  %p739_p8 = scmp.lt.s32.totalorder %s737_s21, %s733_s10 }
  0x28   : > { %v268_v22 = vmul.f32 8.0, %v670_v17  ;;  %v245_v32 = vrot.slane %v244_v24, 2  ;;  %v234_v36 = vadd.f32 %v233_v28, %v232_v20  ;;  %v240_v39 = vadd.f32 %v239_v31, %v238_v23  ;;  %p735_p5 = pnand %p734_p4, %p874_p9 }
  0x29   : > { %v222_v34 = vadd.f32 %v221_v26, %v220_v18  ;;  %v252_v41 = vadd.f32 %v251_v33, %v250_v25  ;;  %v229_v43 = vrot.slane %v228_v35, 1  ;;  %v258_v45 = vadd.f32 %v257_v37, %v256_v29  ;;  %p740_p10 = por %p739_p8, %p738_p7 }
  0x2a   : > { %465 = vperm.xlu0 %668, %v218_v2   ;;  %v269_v30 = vsub.f32 1.0, %v268_v22  ;;  %v246_v40 = vadd.f32 %v245_v32, %v244_v24  ;;  %v235_v44 = vrot.slane %v234_v36, 1  ;;  %v241_v48 = vrot.slane %v240_v39, 1  ;;  %p736_p6 = pneg %p735_p5 }
  0x2b   : > { %v223_v42 = vrot.slane %v222_v34, 1  ;;  %v253_v50 = vrot.slane %v252_v41, 1  ;;  %vm272_vm0 = vweird.f32 %v670_v17  ;;  %v230_v52 = vadd.f32 %v229_v43, %v228_v35 }
  0x2c   : > { %v270_v38 = vmul.f32 %v670_v17, %v269_v30  ;;  %v247_v49 = vrot.slane %v246_v40, 1  ;;  %v236_v53 = vadd.f32 %v235_v44, %v234_v36  ;;  %v242_v55 = vadd.f32 %v241_v48, %v240_v39  ;;  %p741_p13 = pnand %p740_p10, %p736_p6 }
  0x2d   : > { %v224_v51 = vadd.f32 %v223_v42, %v222_v34  ;;  %v254_v57 = vadd.f32 %v253_v50, %v252_v41  ;;  %v259_v58 = vrot.slane %v258_v45, 1  ;;  %v263_v12 = vrot.slane %v262_v1, 2 }
  0x2e   : > { %v271_v46 = vadd.f32 %v670_v17, %v270_v38  ;;  %v248_v56 = vadd.f32 %v247_v49, %v246_v40 }
  0x2f   : > { %v260_v0 = vadd.f32 %v259_v58, %v258_v45 }
  0x30   : > { %v951_v54 = vsel %vm272_vm0, %v670_v17, %v271_v46  ;;  %v264_v17 = vadd.f32 %v263_v12, %v262_v1 }
  0x31   : > { %v274_v60 = vmul.f32 %v951_v54, %v224_v51  ;;  %v275_v61 = vmul.f32 %v951_v54, %v230_v52  ;;  %v276_v62 = vmul.f32 %v951_v54, %v236_v53  ;;  %v277_v63 = vmul.f32 %v951_v54, %v242_v55 }
  0x32   : > { %v278_v2 = vmul.f32 %v951_v54, %v248_v56  ;;  %v279_v10 = vmul.f32 %v951_v54, %v254_v57  ;;  %v280_v14 = vmul.f32 %v951_v54, %v260_v0  ;;  %v265_v20 = vrot.slane %v264_v17, 1 }
  0x33   : > { %v959_v3 = vsub.f32 %v916_v4, %v274_v60  ;;  %v963_v11 = vsub.f32 %v919_v5, %v275_v61  ;;  %v967_v15 = vsub.f32 %v922_v6, %v276_v62  ;;  %v970_v16 = vsub.f32 %v925_v7, %v277_v63 }
  0x34   : > { %v973_v18 = vsub.f32 %v928_v8, %v278_v2  ;;  %v978_v19 = vsub.f32 %v931_v9, %v279_v10  ;;  %v983_v6 = vsub.f32 %v937_v13, %v280_v14  ;;  %v266_v21 = vadd.f32 %v265_v20, %v264_v17 }
  0x35   : > { %v290_v4 = vmul.f32 %v959_v3, %v959_v3  ;;  %v291_v5 = vmul.f32 %v963_v11, %v963_v11  ;;  %v292_v7 = vmul.f32 %v967_v15, %v967_v15  ;;  %v293_v8 = vmul.f32 %v970_v16, %v970_v16 }
  0x36   : > { %v294_v22 = vmul.f32 %v973_v18, %v973_v18  ;;  %v295_v9 = vmul.f32 %v978_v19, %v978_v19  ;;  %v281_v25 = vmul.f32 %v951_v54, %v266_v21  ;;  %v296_v13 = vmul.f32 %v983_v6, %v983_v6 }
  0x37   : > { %v298_v23 = vrot.slane %v290_v4, 4  ;;  %v304_v24 = vrot.slane %v291_v5, 4  ;;  %v310_v26 = vrot.slane %v292_v7, 4  ;;  %v316_v27 = vrot.slane %v293_v8, 4 }
  0x38   : > { %v996_v28 = vsub.f32 %v216_v47, %v281_v25  ;;  %v322_v30 = vrot.slane %v294_v22, 4  ;;  %v328_v32 = vrot.slane %v295_v9, 4  ;;  %v334_v35 = vrot.slane %v296_v13, 4 }
  0x39   : > { %v299_v29 = vadd.f32 %v298_v23, %v290_v4  ;;  %v305_v31 = vadd.f32 %v304_v24, %v291_v5  ;;  %v311_v34 = vadd.f32 %v310_v26, %v292_v7  ;;  %v317_v36 = vadd.f32 %v316_v27, %v293_v8 }
  0x3a   : > { %v297_v33 = vmul.f32 %v996_v28, %v996_v28  ;;  %v323_v38 = vadd.f32 %v322_v30, %v294_v22  ;;  %v329_v41 = vadd.f32 %v328_v32, %v295_v9  ;;  %v335_v43 = vadd.f32 %v334_v35, %v296_v13 }
  0x3b   : > { %v300_v37 = vrot.slane %v299_v29, 2  ;;  %v306_v40 = vrot.slane %v305_v31, 2  ;;  %v312_v42 = vrot.slane %v311_v34, 2  ;;  %v318_v44 = vrot.slane %v317_v36, 2 }
  0x3c   : > { %v340_v39 = vrot.slane %v297_v33, 4  ;;  %v324_v47 = vrot.slane %v323_v38, 2  ;;  %v330_v49 = vrot.slane %v329_v41, 2  ;;  %v336_v51 = vrot.slane %v335_v43, 2 }
  0x3d   : > { %v301_v46 = vadd.f32 %v300_v37, %v299_v29  ;;  %v307_v48 = vadd.f32 %v306_v40, %v305_v31  ;;  %v313_v50 = vadd.f32 %v312_v42, %v311_v34  ;;  %v319_v52 = vadd.f32 %v318_v44, %v317_v36 }
  0x3e   : > { %v341_v45 = vadd.f32 %v340_v39, %v297_v33  ;;  %v325_v56 = vadd.f32 %v324_v47, %v323_v38  ;;  %v331_v58 = vadd.f32 %v330_v49, %v329_v41  ;;  %v337_v60 = vadd.f32 %v336_v51, %v335_v43 }
  0x3f   : > { %v302_v55 = vrot.slane %v301_v46, 1  ;;  %v308_v57 = vrot.slane %v307_v48, 1  ;;  %v314_v59 = vrot.slane %v313_v50, 1  ;;  %v320_v61 = vrot.slane %v319_v52, 1 }
  0x40   : > { %v342_v53 = vrot.slane %v341_v45, 2  ;;  %v326_v0 = vrot.slane %v325_v56, 1  ;;  %v332_v2 = vrot.slane %v331_v58, 1  ;;  %v338_v12 = vrot.slane %v337_v60, 1 }
  0x41   : > { %v303_v63 = vadd.f32 %v302_v55, %v301_v46  ;;  %v309_v1 = vadd.f32 %v308_v57, %v307_v48  ;;  %v315_v10 = vadd.f32 %v314_v59, %v313_v50  ;;  %v321_v14 = vadd.f32 %v320_v61, %v319_v52 }
  0x42   : > { %v343_v62 = vadd.f32 %v342_v53, %v341_v45  ;;  %v327_v4 = vadd.f32 %v326_v0, %v325_v56  ;;  %v333_v20 = vadd.f32 %v332_v2, %v331_v58  ;;  %v339_v8 = vadd.f32 %v338_v12, %v337_v60 }
  0x43   : > { %v346_v5 = vmul.f32 %v303_v63, %v951_v54  ;;  %v347_v7 = vmul.f32 %v309_v1, %v951_v54  ;;  %v348_v21 = vmul.f32 %v315_v10, %v951_v54  ;;  %v349_v23 = vmul.f32 %v321_v14, %v951_v54 }
  0x44   : > { %v344_v17 = vrot.slane %v343_v62, 1  ;;  %v350_v9 = vmul.f32 %v327_v4, %v951_v54  ;;  %v351_v25 = vmul.f32 %v333_v20, %v951_v54  ;;  %v352_v26 = vmul.f32 %v339_v8, %v951_v54 }
  0x45   : > { %v1005_v24 = vadd.f32 1e-06, %v346_v5  ;;  %v1008_v13 = vadd.f32 1e-06, %v347_v7  ;;  %v1011_v27 = vadd.f32 1e-06, %v348_v21 }
  0x46   : > { %v345_v22 = vadd.f32 %v344_v17, %v343_v62  ;;  %v1014_v30 = vadd.f32 1e-06, %v349_v23  ;;  %v1016_v31 = vadd.f32 1e-06, %v350_v9  ;;  %v1019_v32 = vadd.f32 1e-06, %v351_v25 }
  0x47   : > { %671 = vrsqrt.f32 %v1005_v24  ;;  %v1022_v33 = vadd.f32 1e-06, %v352_v26  ;;  %vm368_vm1 = vweird.f32 %v1005_v24  ;;  %vm378_vm3 = vweird.f32 %v1008_v13 }
  0x48   : > { %v353_v29 = vmul.f32 %v345_v22, %v951_v54  ;;  %673 = vrsqrt.f32 %v1008_v13  ;;  %vm388_vm5 = vweird.f32 %v1011_v27  ;;  %vm398_vm8 = vweird.f32 %v1014_v30 }
  0x49   : > { %675 = vrsqrt.f32 %v1011_v27  ;;  %vm408_vm11 = vweird.f32 %v1016_v31  ;;  %vm418_vm14 = vweird.f32 %v1019_v32 }
  0x4a   : > { %v1025_v34 = vadd.f32 1e-06, %v353_v29  ;;  %677 = vrsqrt.f32 %v1014_v30 }
  0x4b   : > { %679 = vrsqrt.f32 %v1016_v31 }
  0x4c   : > { %681 = vrsqrt.f32 %v1019_v32 }
  0x4d   : > { %v1030_v54 = vpop.eup %671  ;;  %683 = vrsqrt.f32 %v1022_v33 }
  0x4e   : > { %v1033_v35 = vpop.eup %673  ;;  %685 = vrsqrt.f32 %v1025_v34  ;;  %v363_v38 = vmul.f32 %v1030_v54, %v1005_v24  ;;  %vm369_vm2 = vweird.f32 %v1030_v54 }
  0x4f   : > { %v1036_v36 = vpop.eup %675  ;;  %v373_v40 = vmul.f32 %v1033_v35, %v1008_v13  ;;  %vm379_vm4 = vweird.f32 %v1033_v35  ;;  %vm1079_vm7 = vmor %vm368_vm1, %vm369_vm2  ;;  %vm428_vm1 = vweird.f32 %v1022_v33 }
  0x50   : > { %v1038_v37 = vpop.eup %677  ;;  %v383_v42 = vmul.f32 %v1036_v36, %v1011_v27  ;;  %v364_v46 = vmul.f32 %v1030_v54, %v363_v38  ;;  %vm389_vm6 = vweird.f32 %v1036_v36  ;;  %vm1086_vm10 = vmor %vm378_vm3, %vm379_vm4  ;;  %vm438_vm4 = vweird.f32 %v1025_v34 }
  0x51   : > { %v1042_v39 = vpop.eup %679  ;;  %v393_v44 = vmul.f32 %v1038_v37, %v1014_v30  ;;  %v374_v48 = vmul.f32 %v1033_v35, %v373_v40  ;;  %vm399_vm9 = vweird.f32 %v1038_v37  ;;  %vm1093_vm13 = vmor %vm388_vm5, %vm389_vm6 }
  0x52   : > { %v1046_v41 = vpop.eup %681  ;;  %v403_v47 = vmul.f32 %v1042_v39, %v1016_v31  ;;  %v384_v50 = vmul.f32 %v1036_v36, %v383_v42  ;;  %v365_v55 = vmul.f32 0.5, %v364_v46  ;;  %vm409_vm12 = vweird.f32 %v1042_v39  ;;  %vm1100_vm0 = vmor %vm398_vm8, %vm399_vm9 }
  0x53   : > { %v1050_v43 = vpop.eup %683  ;;  %v413_v49 = vmul.f32 %v1046_v41, %v1019_v32  ;;  %v394_v52 = vmul.f32 %v1038_v37, %v393_v44  ;;  %v375_v57 = vmul.f32 0.5, %v374_v48  ;;  %vm419_vm15 = vweird.f32 %v1046_v41  ;;  %vm1107_vm3 = vmor %vm408_vm11, %vm409_vm12 }
  0x54   : > { %v1054_v45 = vpop.eup %685  ;;  %v423_v51 = vmul.f32 %v1050_v43, %v1022_v33  ;;  %v404_v56 = vmul.f32 %v1042_v39, %v403_v47  ;;  %v385_v59 = vmul.f32 0.5, %v384_v50  ;;  %v366_v63 = vsub.f32 1.5, %v365_v55  ;;  %vm420_vm6 = vmor %vm418_vm14, %vm419_vm15 }
  0x55   : > { %v433_v53 = vmul.f32 %v1054_v45, %v1025_v34  ;;  %v414_v58 = vmul.f32 %v1046_v41, %v413_v49  ;;  %v395_v61 = vmul.f32 0.5, %v394_v52  ;;  %v376_v1 = vsub.f32 1.5, %v375_v57 }
  0x56   : > { %v424_v60 = vmul.f32 %v1050_v43, %v423_v51  ;;  %v405_v0 = vmul.f32 0.5, %v404_v56  ;;  %v386_v10 = vsub.f32 1.5, %v385_v59  ;;  %v367_v4 = vmul.f32 %v1030_v54, %v366_v63 }
  0x57   : > { %v434_v62 = vmul.f32 %v1054_v45, %v433_v53  ;;  %v415_v2 = vmul.f32 0.5, %v414_v58  ;;  %v396_v14 = vsub.f32 1.5, %v395_v61  ;;  %v377_v7 = vmul.f32 %v1033_v35, %v376_v1 }
  0x58   : > { %v425_v12 = vmul.f32 0.5, %v424_v60  ;;  %v406_v5 = vsub.f32 1.5, %v405_v0  ;;  %v387_v22 = vmul.f32 %v1036_v36, %v386_v10  ;;  %vm429_vm2 = vweird.f32 %v1050_v43 }
  0x59   : > { %v435_v17 = vmul.f32 0.5, %v434_v62  ;;  %v416_v8 = vsub.f32 1.5, %v415_v2  ;;  %v397_v24 = vmul.f32 %v1038_v37, %v396_v14  ;;  %vm439_vm5 = vweird.f32 %v1054_v45  ;;  %vm430_vm8 = vmor %vm428_vm1, %vm429_vm2 }
  0x5a   : > { %v426_v23 = vsub.f32 1.5, %v425_v12  ;;  %v407_v26 = vmul.f32 %v1042_v39, %v406_v5  ;;  %v371_v31 = vsel %vm1079_vm7, %v1030_v54, %v367_v4  ;;  %v381_v33 = vsel %vm1086_vm10, %v1033_v35, %v377_v7  ;;  %vm1133_vm7 = vmor %vm438_vm4, %vm439_vm5 }
  0x5b   : > { %v436_v25 = vsub.f32 1.5, %v435_v17  ;;  %v417_v29 = vmul.f32 %v1046_v41, %v416_v8  ;;  %v391_v38 = vsel %vm1093_vm13, %v1036_v36, %v387_v22  ;;  %v401_v40 = vsel %vm1100_vm0, %v1038_v37, %v397_v24 }
  0x5c   : > { %v427_v34 = vmul.f32 %v1050_v43, %v426_v23  ;;  %v411_v35 = vsel %vm1107_vm3, %v1042_v39, %v407_v26  ;;  %v442_v36 = vmul.f32 %v371_v31, %v959_v3  ;;  %v443_v44 = vmul.f32 %v381_v33, %v963_v11 }
  0x5d   : > { %v437_v54 = vmul.f32 %v1054_v45, %v436_v25  ;;  %v421_v32 = vsel %vm420_vm6, %v1046_v41, %v417_v29  ;;  %v444_v37 = vmul.f32 %v391_v38, %v967_v15  ;;  %v445_v47 = vmul.f32 %v401_v40, %v970_v16 }
  0x5e   : > { %v431_v46 = vsel %vm430_vm8, %v1050_v43, %v427_v34  ;;  %v446_v48 = vmul.f32 %v411_v35, %v973_v18  ;;  %v447_v49 = vmul.f32 %v421_v32, %v978_v19 }
  0x5f   : > { %v441_v39 = vsel %vm1133_vm7, %v1054_v45, %v437_v54  ;;  %v448_v41 = vmul.f32 %v431_v46, %v983_v6 }
  0x60   : > { %v449_v43 = vmul.f32 %v441_v39, %v996_v28 }
  0x94   : > { %v453_v30 = vpop.permute.xlu0 %452 }
  0x95   : > { %v455_v50 = vmul.f32 %v453_v30, %v442_v36  ;;  %v456_v3 = vmul.f32 %v453_v30, %v443_v44  ;;  %v457_v11 = vmul.f32 %v453_v30, %v444_v37  ;;  %v458_v51 = vmul.f32 %v453_v30, %v445_v47 }
  0x96   : > { %v459_v16 = vmul.f32 %v453_v30, %v446_v48  ;;  %v460_v45 = vmul.f32 %v453_v30, %v447_v49  ;;  %v461_v18 = vmul.f32 %v453_v30, %v448_v41  ;;  %v462_v6 = vmul.f32 %v453_v30, %v449_v43 }
  0x9c   : > { %v466_v15 = vpop.permute.xlu0 %465 }
  0x9d   : > { %v468_v52 = vadd.f32 %v466_v15, %v455_v50  ;;  %v469_v53 = vadd.f32 %v466_v15, %v456_v3  ;;  %v470_v55 = vadd.f32 %v466_v15, %v457_v11  ;;  %v471_v56 = vadd.f32 %v466_v15, %v458_v51 }
  0x9e   : > { %v472_v19 = vadd.f32 %v466_v15, %v459_v16  ;;  %v473_v57 = vadd.f32 %v466_v15, %v460_v45  ;;  %v474_v28 = vadd.f32 %v466_v15, %v461_v18  ;;  %v475_v58 = vadd.f32 %v466_v15, %v462_v6 }
  0x9f   : > { %476 = vst [vmem:[%s206_s6] sm:$0xff] %v468_v52 }
  0xa0   : > { %477 = vst [vmem:[%s206_s6 + $0x8] sm:$0xff] %v469_v53 }
  0xa1   : > { %478 = vst [vmem:[%s206_s6 + $0x10] sm:$0xff] %v470_v55 }
  0xa2   : > { %479 = vst [vmem:[%s206_s6 + $0x18] sm:$0xff] %v471_v56 }
  0xa3   : > { %480 = vst [vmem:[%s206_s6 + $0x20] sm:$0xff] %v472_v19 }
  0xa4   : > { %481 = vst [vmem:[%s206_s6 + $0x28] sm:$0xff] %v473_v57 }
  0xa5   : > { %482 = vst [vmem:[%s206_s6 + $0x30] sm:$0xff] %v474_v28 }
  0xa6   : > { %483 = vst [vmem:[%s206_s6 + $0x38] sm:$0xff] %v475_v58 }
  0xa7   : > { %744 = shalt.err (!%p741_p13)
}
  0xa8   : > { %606 = dma.vmem_to_hbm [thread:$0]  (%p874_p9), %s501_s15, 1024, %s503_s7, %s485_s8  }
  0xa9 PF: > { %s514_s11 = sand.u32 1, %s779_s12   ;;  %p613_p0 = pnand %p590_p12, %p881_p11 }
  0xaa   : > { %s515_s28 = scalar_lea.sflag [#allocation4], %s514_s11 }
  0xab   : > { %p614_p1 = pneg %p613_p0 }
  0xad   : > { %774 = dma.done.wait (%p614_p1), %s515_s28, 1024  }
  0xae   : > { %776 = vsyncadd (%p614_p1), %s515_s28, 4294966272  ;;  %s19_s17 = sadd.s32 1, %s799_s17   ;;  %s1210_s12 = smov %s783_s13 }
  0xaf   : > { %p16_p2 = scmp.ge.s32.totalorder %s19_s17, 4   ;;  %s1211_s13 = smov %s787_s14 }
  0xb0   : > { %s1212_s14 = smov %s879_s26  ;;  %s1213_s15 = smov %s795_s16 }
  0xb1   : > { %s1214_s16 = smov %s1216_s20  ;;  %18 = sbr.rel (!%p16_p2) target bundleno = 6 (0x6), region = 77 }
  0xb6   :  { %521 = vsyncpa [#allocation3], 1 }
  0xb7   :  { %523 = vsyncpa [#allocation3 + $0x1], 1 }
  0xb8   :  { %524 = vsyncpa [#allocation4], 1 }
  0xb9   :  { %526 = vsyncpa [#allocation4 + $0x1], 1 }

</bundles_post_ra>
